<compile_context>
chip_gen: v6e
topology: v6e:2x2x1
jax: 0.10.0
libtpu: 0.0.40
codegen_flags: <defaults>
</compile_context>

<pallas_src>
import jax
import jax.numpy as jnp
from jax.experimental import pallas as pl
from jax.experimental.pallas import tpu as pltpu


def _round_up(n, m):
    return ((n + m - 1) // m) * m


def recnet_kernel(x_ref,
                  w1_ref, b1_ref,
                  w2_ref, b2_ref,
                  w3_ref, b3_ref,
                  w4_ref, b4_ref,
                  w5_ref, b5_ref,
                  o_ref):
    # MXU operand dtype follows the weights (f32 or bf16); accumulation is f32,
    # bias add + tanh stay in f32 (EUP/VPU path, safe on v5e which lacks bf16 VPU).
    mxu_dtype = w1_ref.dtype

    h = x_ref[...].astype(mxu_dtype)

    h = jnp.tanh(jnp.dot(h, w1_ref[...], preferred_element_type=jnp.float32)
                 + b1_ref[...])
    h = jnp.tanh(jnp.dot(h.astype(mxu_dtype), w2_ref[...],
                         preferred_element_type=jnp.float32) + b2_ref[...])
    h = jnp.tanh(jnp.dot(h.astype(mxu_dtype), w3_ref[...],
                         preferred_element_type=jnp.float32) + b3_ref[...])
    h = jnp.tanh(jnp.dot(h.astype(mxu_dtype), w4_ref[...],
                         preferred_element_type=jnp.float32) + b4_ref[...])
    y = (jnp.dot(h.astype(mxu_dtype), w5_ref[...],
                 preferred_element_type=jnp.float32) + b5_ref[...])

    o_ref[...] = y.astype(o_ref.dtype)


def init_recnet_params(key, input_size, hidden_size, output_size):
    """PyTorch nn.Linear default init: U(-1/sqrt(fan_in), 1/sqrt(fan_in)).

    Weights stored as (in_features, out_features) (transposed vs torch's (out, in)),
    biases as (1, out_features).  These are the *logical* (unpadded) f32 params.
    """
    dims = [(input_size, hidden_size),
            (hidden_size, hidden_size),
            (hidden_size, hidden_size),
            (hidden_size, hidden_size),
            (hidden_size, output_size)]
    params = {}
    for i, (fan_in, fan_out) in enumerate(dims, start=1):
        key, kw, kb = jax.random.split(key, 3)
        bound = 1.0 / jnp.sqrt(jnp.float32(fan_in))
        params[f"w{i}"] = jax.random.uniform(
            kw, (fan_in, fan_out), jnp.float32, -bound, bound)
        params[f"b{i}"] = jax.random.uniform(
            kb, (1, fan_out), jnp.float32, -bound, bound)
    return params


def pad_params(params, mxu_dtype=jnp.float32, align=128):
    """Zero-pad every weight/bias so all feature dims are multiples of `align`.

    Zero padding is exact for this network: padded hidden features see zero
    weight columns and zero bias, so they stay exactly 0 through tanh and feed
    zero rows of the next layer.  Weights are cast to `mxu_dtype` (bf16 on
    v6e/v7x for 2x MXU throughput + half the weight bytes); biases stay f32.
    """
    padded = {}
    for i in range(1, 6):
        w = params[f"w{i}"]
        b = params[f"b{i}"]
        kin, kout = w.shape
        kin_p, kout_p = _round_up(kin, align), _round_up(kout, align)
        wp = jnp.zeros((kin_p, kout_p), jnp.float32).at[:kin, :kout].set(w)
        bp = jnp.zeros((1, kout_p), jnp.float32).at[:, :kout].set(b)
        padded[f"w{i}"] = wp.astype(mxu_dtype)
        padded[f"b{i}"] = bp  # f32: VPU bias-add stays f32 everywhere (v5e-safe)
    return padded


def recnet_forward(x, padded_params, output_size, *, tm=128):
    """x: (B, input_size) f32; padded_params: output of pad_params.

    Returns (B, output_size) f32.
    """
    batch, f_in = x.shape
    f_in_pad = padded_params["w1"].shape[0]
    out_pad = padded_params["w5"].shape[1]
    hidden_pad = padded_params["w1"].shape[1]

    # Pad batch to a multiple of the batch tile, features to the padded width.
    b_pad = _round_up(max(batch, 1), tm)
    x_p = jnp.zeros((b_pad, f_in_pad), jnp.float32).at[:batch, :f_in].set(x)

    operands = (x_p,
                padded_params["w1"], padded_params["b1"],
                padded_params["w2"], padded_params["b2"],
                padded_params["w3"], padded_params["b3"],
                padded_params["w4"], padded_params["b4"],
                padded_params["w5"], padded_params["b5"])

    # Batch grid: x/out tiled over batch; weights/biases whole-array blocks with
    # constant index_maps -> VMEM-resident across all grid iterations.
    grid = (pl.cdiv(b_pad, tm),)
    in_specs = [pl.BlockSpec((tm, f_in_pad), lambda i: (i, 0))]
    for op in operands[1:]:
        in_specs.append(pl.BlockSpec(op.shape, lambda i: (0, 0)))
    out_spec = pl.BlockSpec((tm, out_pad), lambda i: (i, 0))

    # Advisory cost hint for XLA scheduling around the custom call.
    flops = 2 * b_pad * sum(
        padded_params[f"w{i}"].shape[0] * padded_params[f"w{i}"].shape[1]
        for i in range(1, 6))
    transcendentals = 4 * b_pad * hidden_pad
    bytes_accessed = (sum(int(op.size) * op.dtype.itemsize for op in operands)
                      + b_pad * out_pad * 4)

    out = pl.pallas_call(
        recnet_kernel,
        out_shape=jax.ShapeDtypeStruct((b_pad, out_pad), jnp.float32),
        grid=grid,
        in_specs=in_specs,
        out_specs=out_spec,
        compiler_params=pltpu.CompilerParams(
            dimension_semantics=("parallel",)),
        cost_estimate=pl.CostEstimate(flops=flops,
                                      transcendentals=transcendentals,
                                      bytes_accessed=bytes_accessed),
    )(*operands)

    return out[:batch, :output_size]


def recnet_reference(x, params):
    """Pure-JAX reference of the same forward pass (unpadded f32 params)."""
    h = jnp.tanh(x @ params["w1"] + params["b1"])
    h = jnp.tanh(h @ params["w2"] + params["b2"])
    h = jnp.tanh(h @ params["w3"] + params["b3"])
    h = jnp.tanh(h @ params["w4"] + params["b4"])
    return h @ params["w5"] + params["b5"]


if __name__ == "__main__":
    input_size, hidden_size, output_size = 16, 32, 8
    batch = 8

    key = jax.random.PRNGKey(0)
    key_params, key_x = jax.random.split(key)

    params = init_recnet_params(key_params, input_size, hidden_size, output_size)
    x = jax.random.normal(key_x, (batch, input_size), jnp.float32)

    ref = recnet_reference(x, params)

    # f32-weight path: exact parity with the reference.
    padded_f32 = pad_params(params, mxu_dtype=jnp.float32)
    out = jax.block_until_ready(recnet_forward(x, padded_f32, output_size))
    assert out.shape == (batch, output_size)
    assert jnp.allclose(out, ref, atol=1e-5, rtol=1e-5), "f32 mismatch vs reference"

    # bf16-weight MXU path (v6e/v7x fast path): f32 accumulation + f32 tanh,
    # so only weight quantization error remains -> loose tolerance.
    padded_bf16 = pad_params(params, mxu_dtype=jnp.bfloat16)
    out_bf16 = jax.block_until_ready(recnet_forward(x, padded_bf16, output_size))
    assert out_bf16.shape == (batch, output_size)
    assert jnp.allclose(out_bf16, ref, atol=1e-1, rtol=1e-1), "bf16 mismatch vs reference"

    print("KERNEL_OK")
</pallas_src>

<mosaic_0001>
module attributes {stable_mosaic.version = 11 : i64} {
  func.func @recnet_kernel(%arg0: i32, %arg1: memref<128x128xf32, #tpu.memory_space<vmem>>, %arg2: memref<128x128xf32, #tpu.memory_space<vmem>>, %arg3: memref<1x128xf32, #tpu.memory_space<vmem>>, %arg4: memref<128x128xf32, #tpu.memory_space<vmem>>, %arg5: memref<1x128xf32, #tpu.memory_space<vmem>>, %arg6: memref<128x128xf32, #tpu.memory_space<vmem>>, %arg7: memref<1x128xf32, #tpu.memory_space<vmem>>, %arg8: memref<128x128xf32, #tpu.memory_space<vmem>>, %arg9: memref<1x128xf32, #tpu.memory_space<vmem>>, %arg10: memref<128x128xf32, #tpu.memory_space<vmem>>, %arg11: memref<1x128xf32, #tpu.memory_space<vmem>>, %arg12: memref<128x128xf32, #tpu.memory_space<vmem>>) attributes {dimension_semantics = [#tpu.dimension_semantics<parallel>], iteration_bounds = array<i64: 1>, scalar_prefetch = 0 : i64, scratch_operands = 0 : i64, tpu.core_type = #tpu.core_type<tc>, window_params = [{transform_indices = @transform_0, window_bounds = array<i64: 128, 128>}, {pipeline_mode = #tpu.pipeline_mode<synchronous>, transform_indices = @transform_1, window_bounds = array<i64: 128, 128>}, {pipeline_mode = #tpu.pipeline_mode<synchronous>, transform_indices = @transform_2, window_bounds = array<i64: 1, 128>}, {pipeline_mode = #tpu.pipeline_mode<synchronous>, transform_indices = @transform_3, window_bounds = array<i64: 128, 128>}, {pipeline_mode = #tpu.pipeline_mode<synchronous>, transform_indices = @transform_4, window_bounds = array<i64: 1, 128>}, {pipeline_mode = #tpu.pipeline_mode<synchronous>, transform_indices = @transform_5, window_bounds = array<i64: 128, 128>}, {pipeline_mode = #tpu.pipeline_mode<synchronous>, transform_indices = @transform_6, window_bounds = array<i64: 1, 128>}, {pipeline_mode = #tpu.pipeline_mode<synchronous>, transform_indices = @transform_7, window_bounds = array<i64: 128, 128>}, {pipeline_mode = #tpu.pipeline_mode<synchronous>, transform_indices = @transform_8, window_bounds = array<i64: 1, 128>}, {pipeline_mode = #tpu.pipeline_mode<synchronous>, transform_indices = @transform_9, window_bounds = array<i64: 128, 128>}, {pipeline_mode = #tpu.pipeline_mode<synchronous>, transform_indices = @transform_10, window_bounds = array<i64: 1, 128>}, {transform_indices = @transform_11, window_bounds = array<i64: 128, 128>}]} {
    %c0 = arith.constant 0 : index
    %c0_0 = arith.constant 0 : index
    %0 = vector.load %arg1[%c0, %c0_0] : memref<128x128xf32, #tpu.memory_space<vmem>>, vector<128x128xf32>
    %c0_1 = arith.constant 0 : index
    %c0_2 = arith.constant 0 : index
    %1 = vector.load %arg2[%c0_1, %c0_2] : memref<128x128xf32, #tpu.memory_space<vmem>>, vector<128x128xf32>
    %cst = arith.constant dense<0.000000e+00> : vector<128x128xf32>
    %2 = tpu.matmul %0, %1, %cst {dimension_numbers = #tpu.dot_dimension_numbers<[1], [0], [0], [1], [0, 0, 1, 1], [], []>} : vector<128x128xf32>, vector<128x128xf32>, vector<128x128xf32> -> vector<128x128xf32>
    %c0_3 = arith.constant 0 : index
    %c0_4 = arith.constant 0 : index
    %3 = vector.load %arg3[%c0_3, %c0_4] : memref<1x128xf32, #tpu.memory_space<vmem>>, vector<1x128xf32>
    %4 = vector.broadcast %3 : vector<1x128xf32> to vector<128x128xf32>
    %5 = arith.addf %2, %4 : vector<128x128xf32>
    %6 = math.tanh %5 : vector<128x128xf32>
    %c0_5 = arith.constant 0 : index
    %c0_6 = arith.constant 0 : index
    %7 = vector.load %arg4[%c0_5, %c0_6] : memref<128x128xf32, #tpu.memory_space<vmem>>, vector<128x128xf32>
    %cst_7 = arith.constant dense<0.000000e+00> : vector<128x128xf32>
    %8 = tpu.matmul %6, %7, %cst_7 {dimension_numbers = #tpu.dot_dimension_numbers<[1], [0], [0], [1], [0, 0, 1, 1], [], []>} : vector<128x128xf32>, vector<128x128xf32>, vector<128x128xf32> -> vector<128x128xf32>
    %c0_8 = arith.constant 0 : index
    %c0_9 = arith.constant 0 : index
    %9 = vector.load %arg5[%c0_8, %c0_9] : memref<1x128xf32, #tpu.memory_space<vmem>>, vector<1x128xf32>
    %10 = vector.broadcast %9 : vector<1x128xf32> to vector<128x128xf32>
    %11 = arith.addf %8, %10 : vector<128x128xf32>
    %12 = math.tanh %11 : vector<128x128xf32>
    %c0_10 = arith.constant 0 : index
    %c0_11 = arith.constant 0 : index
    %13 = vector.load %arg6[%c0_10, %c0_11] : memref<128x128xf32, #tpu.memory_space<vmem>>, vector<128x128xf32>
    %cst_12 = arith.constant dense<0.000000e+00> : vector<128x128xf32>
    %14 = tpu.matmul %12, %13, %cst_12 {dimension_numbers = #tpu.dot_dimension_numbers<[1], [0], [0], [1], [0, 0, 1, 1], [], []>} : vector<128x128xf32>, vector<128x128xf32>, vector<128x128xf32> -> vector<128x128xf32>
    %c0_13 = arith.constant 0 : index
    %c0_14 = arith.constant 0 : index
    %15 = vector.load %arg7[%c0_13, %c0_14] : memref<1x128xf32, #tpu.memory_space<vmem>>, vector<1x128xf32>
    %16 = vector.broadcast %15 : vector<1x128xf32> to vector<128x128xf32>
    %17 = arith.addf %14, %16 : vector<128x128xf32>
    %18 = math.tanh %17 : vector<128x128xf32>
    %c0_15 = arith.constant 0 : index
    %c0_16 = arith.constant 0 : index
    %19 = vector.load %arg8[%c0_15, %c0_16] : memref<128x128xf32, #tpu.memory_space<vmem>>, vector<128x128xf32>
    %cst_17 = arith.constant dense<0.000000e+00> : vector<128x128xf32>
    %20 = tpu.matmul %18, %19, %cst_17 {dimension_numbers = #tpu.dot_dimension_numbers<[1], [0], [0], [1], [0, 0, 1, 1], [], []>} : vector<128x128xf32>, vector<128x128xf32>, vector<128x128xf32> -> vector<128x128xf32>
    %c0_18 = arith.constant 0 : index
    %c0_19 = arith.constant 0 : index
    %21 = vector.load %arg9[%c0_18, %c0_19] : memref<1x128xf32, #tpu.memory_space<vmem>>, vector<1x128xf32>
    %22 = vector.broadcast %21 : vector<1x128xf32> to vector<128x128xf32>
    %23 = arith.addf %20, %22 : vector<128x128xf32>
    %24 = math.tanh %23 : vector<128x128xf32>
    %c0_20 = arith.constant 0 : index
    %c0_21 = arith.constant 0 : index
    %25 = vector.load %arg10[%c0_20, %c0_21] : memref<128x128xf32, #tpu.memory_space<vmem>>, vector<128x128xf32>
    %cst_22 = arith.constant dense<0.000000e+00> : vector<128x128xf32>
    %26 = tpu.matmul %24, %25, %cst_22 {dimension_numbers = #tpu.dot_dimension_numbers<[1], [0], [0], [1], [0, 0, 1, 1], [], []>} : vector<128x128xf32>, vector<128x128xf32>, vector<128x128xf32> -> vector<128x128xf32>
    %c0_23 = arith.constant 0 : index
    %c0_24 = arith.constant 0 : index
    %27 = vector.load %arg11[%c0_23, %c0_24] : memref<1x128xf32, #tpu.memory_space<vmem>>, vector<1x128xf32>
    %28 = vector.broadcast %27 : vector<1x128xf32> to vector<128x128xf32>
    %29 = arith.addf %26, %28 : vector<128x128xf32>
    %c0_25 = arith.constant 0 : index
    %c0_26 = arith.constant 0 : index
    %30 = vector.load %arg12[%c0_25, %c0_26] : memref<128x128xf32, #tpu.memory_space<vmem>>, vector<128x128xf32>
    tpu.vector_store %arg12[%c0_25, %c0_26], %29 {strides = array<i32>} : memref<128x128xf32, #tpu.memory_space<vmem>>, vector<128x128xf32>,
    return
  }
  func.func @transform_0(%arg0: i32) -> (i32, i32) {
    %c0_i32 = arith.constant 0 : i32
    %c0_i32_0 = arith.constant 0 : i32
    return %arg0, %c0_i32 : i32, i32
  }
  func.func @transform_1(%arg0: i32) -> (i32, i32) {
    %c0_i32 = arith.constant 0 : i32
    %c0_i32_0 = arith.constant 0 : i32
    %c0_i32_1 = arith.constant 0 : i32
    return %c0_i32, %c0_i32_0 : i32, i32
  }
  func.func @transform_2(%arg0: i32) -> (i32, i32) {
    %c0_i32 = arith.constant 0 : i32
    %c0_i32_0 = arith.constant 0 : i32
    %c0_i32_1 = arith.constant 0 : i32
    return %c0_i32, %c0_i32_0 : i32, i32
  }
  func.func @transform_3(%arg0: i32) -> (i32, i32) {
    %c0_i32 = arith.constant 0 : i32
    %c0_i32_0 = arith.constant 0 : i32
    %c0_i32_1 = arith.constant 0 : i32
    return %c0_i32, %c0_i32_0 : i32, i32
  }
  func.func @transform_4(%arg0: i32) -> (i32, i32) {
    %c0_i32 = arith.constant 0 : i32
    %c0_i32_0 = arith.constant 0 : i32
    %c0_i32_1 = arith.constant 0 : i32
    return %c0_i32, %c0_i32_0 : i32, i32
  }
  func.func @transform_5(%arg0: i32) -> (i32, i32) {
    %c0_i32 = arith.constant 0 : i32
    %c0_i32_0 = arith.constant 0 : i32
    %c0_i32_1 = arith.constant 0 : i32
    return %c0_i32, %c0_i32_0 : i32, i32
  }
  func.func @transform_6(%arg0: i32) -> (i32, i32) {
    %c0_i32 = arith.constant 0 : i32
    %c0_i32_0 = arith.constant 0 : i32
    %c0_i32_1 = arith.constant 0 : i32
    return %c0_i32, %c0_i32_0 : i32, i32
  }
  func.func @transform_7(%arg0: i32) -> (i32, i32) {
    %c0_i32 = arith.constant 0 : i32
    %c0_i32_0 = arith.constant 0 : i32
    %c0_i32_1 = arith.constant 0 : i32
    return %c0_i32, %c0_i32_0 : i32, i32
  }
  func.func @transform_8(%arg0: i32) -> (i32, i32) {
    %c0_i32 = arith.constant 0 : i32
    %c0_i32_0 = arith.constant 0 : i32
    %c0_i32_1 = arith.constant 0 : i32
    return %c0_i32, %c0_i32_0 : i32, i32
  }
  func.func @transform_9(%arg0: i32) -> (i32, i32) {
    %c0_i32 = arith.constant 0 : i32
    %c0_i32_0 = arith.constant 0 : i32
    %c0_i32_1 = arith.constant 0 : i32
    return %c0_i32, %c0_i32_0 : i32, i32
  }
  func.func @transform_10(%arg0: i32) -> (i32, i32) {
    %c0_i32 = arith.constant 0 : i32
    %c0_i32_0 = arith.constant 0 : i32
    %c0_i32_1 = arith.constant 0 : i32
    return %c0_i32, %c0_i32_0 : i32, i32
  }
  func.func @transform_11(%arg0: i32) -> (i32, i32) {
    %c0_i32 = arith.constant 0 : i32
    %c0_i32_0 = arith.constant 0 : i32
    return %arg0, %c0_i32 : i32, i32
  }
}

</mosaic_0001>

<bundles_post_ra>
// kernel: tpu_custom_call.1
= control target key start
LH: loop header
LB: loop body
LE: loop exit
PB: predicated region body
PF: predicated region fallthrough
CT: control target
= control target key end

     0   :  { %16 = vsyncpa [#allocation3], 0  ;;  %s2003_s0 = inlined_call_operand.hbm [shape: f32[128,128], index: 0, kind: input, shape index: {}]   ;;  %s2004_s1 = inlined_call_operand.hbm [shape: f32[128,128], index: 1, kind: input, shape index: {}]   ;;  %s2005_s2 = inlined_call_operand.vmem [shape: f32[1,128], index: 2, kind: input, shape index: {}]   ;;  %s2006_s3 = inlined_call_operand.hbm [shape: f32[128,128], index: 3, kind: input, shape index: {}]   ;;  %s2007_s4 = inlined_call_operand.vmem [shape: f32[1,128], index: 4, kind: input, shape index: {}]   ;;  %s2008_s5 = inlined_call_operand.hbm [shape: f32[128,128], index: 5, kind: input, shape index: {}]   ;;  %s2009_s6 = inlined_call_operand.vmem [shape: f32[1,128], index: 6, kind: input, shape index: {}]   ;;  %s2010_s7 = inlined_call_operand.hbm [shape: f32[128,128], index: 7, kind: input, shape index: {}]   ;;  %s2011_s8 = inlined_call_operand.vmem [shape: f32[1,128], index: 8, kind: input, shape index: {}]   ;;  %s2012_s9 = inlined_call_operand.hbm [shape: f32[128,128], index: 9, kind: input, shape index: {}]   ;;  %s2013_s10 = inlined_call_operand.vmem [shape: f32[1,128], index: 10, kind: input, shape index: {}]   ;;  %s2014_s11 = inlined_call_operand.hbm [shape: f32[128,128], index: 11, kind: output, shape index: {}]  }
   0x1   :  { %17 = vsyncpa [#allocation6], 0 }
   0x2   :  { %18 = vsyncpa [#allocation9], 0 }
   0x3   :  { %19 = vsyncpa [#allocation12], 0 }
   0x4   :  { %20 = vsyncpa [#allocation4], 0  ;;  %s1841_s17 = smov [#allocation5]   ;;  %s1842_s19 = smov [#allocation8]  }
   0x5   :  { %s38_s18 = sshll.u32 %s1841_s17, 4  ;;  %s66_s20 = sshll.u32 %s1842_s19, 4  ;;  %s39_s18 = int_to_ptr.vmem [resolvable:$true] %s38_s18  ;;  %s67_s20 = int_to_ptr.vmem [resolvable:$true] %s66_s20 }
   0x6   :  { %s1699_s21 = scalar_lea.vmem %s39_s18, 2048  ;;  %p1704_p1 = scmp.lt.s32.totalorder %s39_s18, %s39_s18 }
   0x7   :  { %p1700_p0 = scmp.ne.s32.totalorder %s39_s18, %s1699_s21  ;;  %p1705_p2 = scmp.lt.s32.totalorder %s1699_s21, %s1699_s21 }
   0x9   :  { %p1706_p3 = por %p1705_p2, %p1704_p1 }
   0xb   :  { %p1707_p4 = pnand %p1706_p3, %p1700_p0 }
   0xd   :  { %1710 = shalt.err (!%p1707_p4)
}
   0xe   :  { %s1843_s22 = smov 128   ;;  %s1844_s23 = smov 8  }
   0xf   :  { %44 = dma.hbm_to_vmem [thread:$0]  %s2004_s1, 2048, %s39_s18, [#allocation6], %s1843_s22, %s1843_s22, %s1844_s23  }
  0x10   :  { %s1719_s26 = scalar_lea.vmem %s67_s20, 2048  ;;  %p1724_p6 = scmp.lt.s32.totalorder %s67_s20, %s67_s20 }
  0x11   :  { %p1720_p5 = scmp.ne.s32.totalorder %s67_s20, %s1719_s26  ;;  %p1725_p7 = scmp.lt.s32.totalorder %s1719_s26, %s1719_s26 }
  0x13   :  { %p1726_p8 = por %p1725_p7, %p1724_p6 }
  0x15   :  { %p1727_p9 = pnand %p1726_p8, %p1720_p5 }
  0x17   :  { %1730 = shalt.err (!%p1727_p9)
}
  0x18   :  { %72 = dma.hbm_to_vmem [thread:$0]  %s2008_s5, 2048, %s67_s20, [#allocation9], %s1843_s22, %s1843_s22, %s1844_s23  }
  0x19   :  { %s1845_s29 = smov [#allocation2]   ;;  %s1846_s12 = smov [#allocation7]  }
  0x1a   :  { %s26_s30 = sshll.u32 %s1845_s29, 4  ;;  %s52_s13 = sshll.u32 %s1846_s12, 4  ;;  %s27_s30 = int_to_ptr.vmem [resolvable:$true] %s26_s30  ;;  %s53_s13 = int_to_ptr.vmem [resolvable:$true] %s52_s13 }
  0x1b   :  { %s1739_s1 = scalar_lea.vmem %s27_s30, 2048  ;;  %p1744_p11 = scmp.lt.s32.totalorder %s27_s30, %s27_s30 }
  0x1c   :  { %p1740_p10 = scmp.ne.s32.totalorder %s27_s30, %s1739_s1  ;;  %p1745_p12 = scmp.lt.s32.totalorder %s1739_s1, %s1739_s1 }
  0x1e   :  { %p1746_p13 = por %p1745_p12, %p1744_p11 }
  0x20   :  { %p1747_p0 = pnand %p1746_p13, %p1740_p10 }
  0x22   :  { %1750 = shalt.err (!%p1747_p0)
}
  0x23   :  { %32 = dma.hbm_to_vmem [thread:$0]  %s2003_s0, 2048, %s27_s30, [#allocation3], %s1843_s22, %s1843_s22, %s1844_s23  }
  0x24   :  { %s1759_s5 = scalar_lea.vmem %s53_s13, 2048  ;;  %p1764_p2 = scmp.lt.s32.totalorder %s53_s13, %s53_s13 }
  0x25   :  { %p1760_p1 = scmp.ne.s32.totalorder %s53_s13, %s1759_s5  ;;  %p1765_p3 = scmp.lt.s32.totalorder %s1759_s5, %s1759_s5 }
  0x27   :  { %p1766_p4 = por %p1765_p3, %p1764_p2 }
  0x29   :  { %p1767_p5 = pnand %p1766_p4, %p1760_p1 }
  0x2b   :  { %1770 = shalt.err (!%p1767_p5)
}
  0x2c   :  { %58 = dma.hbm_to_vmem [thread:$0]  %s2006_s3, 2048, %s53_s13, [#allocation6], %s1843_s22, %s1843_s22, %s1844_s23  }
  0x2d   :  { %s1847_s18 = smov [#allocation10]   ;;  %s1848_s20 = smov [#allocation11]  }
  0x2e   :  { %s80_s19 = sshll.u32 %s1847_s18, 4  ;;  %s94_s21 = sshll.u32 %s1848_s20, 4  ;;  %s81_s19 = int_to_ptr.vmem [resolvable:$true] %s80_s19  ;;  %s95_s21 = int_to_ptr.vmem [resolvable:$true] %s94_s21 }
  0x2f   :  { %s1779_s0 = scalar_lea.vmem %s81_s19, 2048  ;;  %p1784_p7 = scmp.lt.s32.totalorder %s81_s19, %s81_s19 }
  0x30   :  { %p1780_p6 = scmp.ne.s32.totalorder %s81_s19, %s1779_s0  ;;  %p1785_p8 = scmp.lt.s32.totalorder %s1779_s0, %s1779_s0 }
  0x32   :  { %p1786_p9 = por %p1785_p8, %p1784_p7 }
  0x34   :  { %p1787_p10 = pnand %p1786_p9, %p1780_p6 }
  0x36   :  { %1790 = shalt.err (!%p1787_p10)
}
  0x37   :  { %86 = dma.hbm_to_vmem [thread:$0]  %s2010_s7, 2048, %s81_s19, [#allocation9], %s1843_s22, %s1843_s22, %s1844_s23  }
  0x38   :  { %s1799_s3 = scalar_lea.vmem %s95_s21, 2048  ;;  %p1804_p12 = scmp.lt.s32.totalorder %s95_s21, %s95_s21 }
  0x39   :  { %p1800_p11 = scmp.ne.s32.totalorder %s95_s21, %s1799_s3  ;;  %p1805_p13 = scmp.lt.s32.totalorder %s1799_s3, %s1799_s3 }
  0x3b   :  { %p1806_p0 = por %p1805_p13, %p1804_p12 }
  0x3d   :  { %p1807_p1 = pnand %p1806_p0, %p1800_p11 }
  0x3f   :  { %1810 = shalt.err (!%p1807_p1)
}
  0x40   :  { %100 = dma.hbm_to_vmem [thread:$0]  %s2012_s9, 2048, %s95_s21, [#allocation12], %s1843_s22, %s1843_s22, %s1844_s23  }
  0x41   :  { %1831 = dma.done.wait [#allocation3], 2048  }
  0x42   :  { %1832 = vsyncadd [#allocation3], 4294965248 }
  0x43   :  { %1833 = dma.done.wait [#allocation6], 4096  }
  0x44   :  { %1834 = vsyncadd [#allocation6], 4294963200 }
  0x45   :  { %1835 = dma.done.wait [#allocation9], 4096  }
  0x46   :  { %1836 = vsyncadd [#allocation9], 4294963200 }
  0x47   :  { %1837 = dma.done.wait [#allocation12], 2048  }
  0x48   :  { %1838 = vsyncadd [#allocation12], 4294965248  ;;  %v152_v0 = vld [vmem:[#allocation5 + $0x78] sm:$0xff]  ;;  %v151_v1 = vld [vmem:[#allocation5 + $0x70] sm:$0xff] }
  0x49   :  { %1242 = vmatprep.subr.mxu0 %v152_v0  ;;  %v150_v2 = vld [vmem:[#allocation5 + $0x68] sm:$0xff]  ;;  %v149_v3 = vld [vmem:[#allocation5 + $0x60] sm:$0xff]  ;;  %v148_v5 = vld [vmem:[#allocation5 + $0x58] sm:$0xff] }
  0x4a   :  { %1243 = vmatpush3.msra.mxu0 %v152_v0  ;;  %v121_v4 = vld [vmem:[#allocation2] sm:$0xff]  ;;  %v147_v6 = vld [vmem:[#allocation5 + $0x50] sm:$0xff]  ;;  %v146_v7 = vld [vmem:[#allocation5 + $0x48] sm:$0xff] }
  0x4b   :  { %1244 = vmatprep.subr.mxu0 %v151_v1  ;;  %1274 = vmatprep.mubr.f32.mxu0 %v121_v4  ;;  %v336_v8 = vld [vmem:[#allocation7 + $0x78] sm:$0xff]  ;;  %v335_v9 = vld [vmem:[#allocation7 + $0x70] sm:$0xff]  ;;  %v145_v10 = vld [vmem:[#allocation5 + $0x40] sm:$0xff] }
  0x4c   :  { %1245 = vmatpush3.msra.mxu0 %v151_v1  ;;  %1298 = vmatprep.subr.mxu1 %v336_v8  ;;  %v334_v11 = vld [vmem:[#allocation7 + $0x68] sm:$0xff]  ;;  %v144_v12 = vld [vmem:[#allocation5 + $0x38] sm:$0xff]  ;;  %v333_v13 = vld [vmem:[#allocation7 + $0x60] sm:$0xff] }
  0x4d   :  { %1246 = vmatprep.subr.mxu0 %v150_v2  ;;  %1299 = vmatpush3.msra.mxu1 %v336_v8  ;;  %v143_v14 = vld [vmem:[#allocation5 + $0x30] sm:$0xff]  ;;  %v332_v15 = vld [vmem:[#allocation7 + $0x58] sm:$0xff]  ;;  %v142_v16 = vld [vmem:[#allocation5 + $0x28] sm:$0xff] }
  0x4e   :  { %1247 = vmatpush3.msra.mxu0 %v150_v2  ;;  %1300 = vmatprep.subr.mxu1 %v335_v9  ;;  %v331_v17 = vld [vmem:[#allocation7 + $0x50] sm:$0xff]  ;;  %v141_v18 = vld [vmem:[#allocation5 + $0x20] sm:$0xff]  ;;  %v140_v19 = vld [vmem:[#allocation5 + $0x18] sm:$0xff] }
  0x4f   :  { %1248 = vmatprep.subr.mxu0 %v149_v3  ;;  %1301 = vmatpush3.msra.mxu1 %v335_v9  ;;  %v139_v20 = vld [vmem:[#allocation5 + $0x10] sm:$0xff]  ;;  %v138_v21 = vld [vmem:[#allocation5 + $0x8] sm:$0xff]  ;;  %v137_v22 = vld [vmem:[#allocation5] sm:$0xff] }
  0x50   :  { %1249 = vmatpush3.msra.mxu0 %v149_v3  ;;  %1302 = vmatprep.subr.mxu1 %v334_v11  ;;  %v122_v23 = vld [vmem:[#allocation2 + $0x8] sm:$0xff]  ;;  %v123_v24 = vld [vmem:[#allocation2 + $0x10] sm:$0xff]  ;;  %v124_v25 = vld [vmem:[#allocation2 + $0x18] sm:$0xff] }
  0x51   :  { %1250 = vmatprep.subr.mxu0 %v148_v5  ;;  %1303 = vmatpush3.msra.mxu1 %v334_v11  ;;  %v125_v26 = vld [vmem:[#allocation2 + $0x20] sm:$0xff]  ;;  %v126_v27 = vld [vmem:[#allocation2 + $0x28] sm:$0xff]  ;;  %v127_v28 = vld [vmem:[#allocation2 + $0x30] sm:$0xff] }
  0x52   :  { %1251 = vmatpush3.msra.mxu0 %v148_v5  ;;  %1304 = vmatprep.subr.mxu1 %v333_v13  ;;  %v128_v29 = vld [vmem:[#allocation2 + $0x38] sm:$0xff]  ;;  %v129_v30 = vld [vmem:[#allocation2 + $0x40] sm:$0xff]  ;;  %v130_v31 = vld [vmem:[#allocation2 + $0x48] sm:$0xff] }
  0x53   :  { %1252 = vmatprep.subr.mxu0 %v147_v6  ;;  %1305 = vmatpush3.msra.mxu1 %v333_v13  ;;  %v131_v32 = vld [vmem:[#allocation2 + $0x50] sm:$0xff]  ;;  %v132_v33 = vld [vmem:[#allocation2 + $0x58] sm:$0xff]  ;;  %v133_v34 = vld [vmem:[#allocation2 + $0x60] sm:$0xff] }
  0x54   :  { %1253 = vmatpush3.msra.mxu0 %v147_v6  ;;  %1306 = vmatprep.subr.mxu1 %v332_v15  ;;  %v134_v35 = vld [vmem:[#allocation2 + $0x68] sm:$0xff]  ;;  %v135_v36 = vld [vmem:[#allocation2 + $0x70] sm:$0xff]  ;;  %v136_v37 = vld [vmem:[#allocation2 + $0x78] sm:$0xff] }
  0x55   :  { %1254 = vmatprep.subr.mxu0 %v146_v7  ;;  %1307 = vmatpush3.msra.mxu1 %v332_v15  ;;  %v330_v38 = vld [vmem:[#allocation7 + $0x48] sm:$0xff]  ;;  %v329_v39 = vld [vmem:[#allocation7 + $0x40] sm:$0xff]  ;;  %v328_v40 = vld [vmem:[#allocation7 + $0x38] sm:$0xff] }
  0x56   :  { %1255 = vmatpush3.msra.mxu0 %v146_v7  ;;  %1308 = vmatprep.subr.mxu1 %v331_v17  ;;  %v327_v41 = vld [vmem:[#allocation7 + $0x30] sm:$0xff]  ;;  %v326_v42 = vld [vmem:[#allocation7 + $0x28] sm:$0xff]  ;;  %v325_v43 = vld [vmem:[#allocation7 + $0x20] sm:$0xff] }
  0x57   :  { %1256 = vmatprep.subr.mxu0 %v145_v10  ;;  %1309 = vmatpush3.msra.mxu1 %v331_v17  ;;  %v324_v44 = vld [vmem:[#allocation7 + $0x18] sm:$0xff]  ;;  %v323_v45 = vld [vmem:[#allocation7 + $0x10] sm:$0xff]  ;;  %v322_v46 = vld [vmem:[#allocation7 + $0x8] sm:$0xff] }
  0x58   :  { %1257 = vmatpush3.msra.mxu0 %v145_v10  ;;  %1310 = vmatprep.subr.mxu1 %v330_v38  ;;  %v321_v47 = vld [vmem:[#allocation7] sm:$0xff]  ;;  %v520_v48 = vld [vmem:[#allocation8 + $0x78] sm:$0xff]  ;;  %v519_v49 = vld [vmem:[#allocation8 + $0x70] sm:$0xff] }
  0x59   :  { %1258 = vmatprep.subr.mxu0 %v144_v12  ;;  %1311 = vmatpush3.msra.mxu1 %v330_v38  ;;  %v518_v50 = vld [vmem:[#allocation8 + $0x68] sm:$0xff]  ;;  %v517_v51 = vld [vmem:[#allocation8 + $0x60] sm:$0xff]  ;;  %v516_v52 = vld [vmem:[#allocation8 + $0x58] sm:$0xff] }
  0x5a   :  { %1259 = vmatpush3.msra.mxu0 %v144_v12  ;;  %1312 = vmatprep.subr.mxu1 %v329_v39  ;;  %v515_v53 = vld [vmem:[#allocation8 + $0x50] sm:$0xff]  ;;  %v514_v54 = vld [vmem:[#allocation8 + $0x48] sm:$0xff]  ;;  %v1077_v55 = vld [vmem:[%s2005_s2] ss:$0 sm:$0xff] }
  0x5b   :  { %1260 = vmatprep.subr.mxu0 %v143_v14  ;;  %1313 = vmatpush3.msra.mxu1 %v329_v39 }
  0x5c   :  { %1261 = vmatpush3.msra.mxu0 %v143_v14  ;;  %1314 = vmatprep.subr.mxu1 %v328_v40 }
  0x5d   :  { %1262 = vmatprep.subr.mxu0 %v142_v16  ;;  %1315 = vmatpush3.msra.mxu1 %v328_v40  ;;  %v513_v40 = vld [vmem:[#allocation8 + $0x40] sm:$0xff] }
  0x5e   :  { %1263 = vmatpush3.msra.mxu0 %v142_v16  ;;  %1316 = vmatprep.subr.mxu1 %v327_v41 }
  0x5f   :  { %1264 = vmatprep.subr.mxu0 %v141_v18  ;;  %1317 = vmatpush3.msra.mxu1 %v327_v41  ;;  %v512_v41 = vld [vmem:[#allocation8 + $0x38] sm:$0xff] }
  0x60   :  { %1265 = vmatpush3.msra.mxu0 %v141_v18  ;;  %1318 = vmatprep.subr.mxu1 %v326_v42 }
  0x61   :  { %1266 = vmatprep.subr.mxu0 %v140_v19  ;;  %1319 = vmatpush3.msra.mxu1 %v326_v42  ;;  %v511_v42 = vld [vmem:[#allocation8 + $0x30] sm:$0xff] }
  0x62   :  { %1267 = vmatpush3.msra.mxu0 %v140_v19  ;;  %1320 = vmatprep.subr.mxu1 %v325_v43 }
  0x63   :  { %1268 = vmatprep.subr.mxu0 %v139_v20  ;;  %1321 = vmatpush3.msra.mxu1 %v325_v43  ;;  %v510_v43 = vld [vmem:[#allocation8 + $0x28] sm:$0xff] }
  0x64   :  { %1269 = vmatpush3.msra.mxu0 %v139_v20  ;;  %1322 = vmatprep.subr.mxu1 %v324_v44 }
  0x65   :  { %1270 = vmatprep.subr.mxu0 %v138_v21  ;;  %1323 = vmatpush3.msra.mxu1 %v324_v44  ;;  %v509_v44 = vld [vmem:[#allocation8 + $0x20] sm:$0xff] }
  0x66   :  { %1271 = vmatpush3.msra.mxu0 %v138_v21  ;;  %1324 = vmatprep.subr.mxu1 %v323_v45 }
  0x67   :  { %1272 = vmatprep.subr.mxu0 %v137_v22  ;;  %1325 = vmatpush3.msra.mxu1 %v323_v45  ;;  %v508_v45 = vld [vmem:[#allocation8 + $0x18] sm:$0xff] }
  0x68   :  { %1273 = vmatpush3.msra.mxu0 %v137_v22  ;;  %1326 = vmatprep.subr.mxu1 %v322_v46 }
  0x69   :  { %1275 = vmatmul.mubr.f32.vlgmr.msra.gmra.mxu0 %v122_v23  ;;  %1327 = vmatpush3.msra.mxu1 %v322_v46  ;;  %v507_v46 = vld [vmem:[#allocation8 + $0x10] sm:$0xff] }
  0x6a   :  { %1277 = vmatprep.mubr.f32.mxu0 %v123_v24  ;;  %1328 = vmatprep.subr.mxu1 %v321_v47 }
  0x6b   :  { %1329 = vmatpush3.msra.mxu1 %v321_v47  ;;  %1354 = vmatprep.subr.mxu0 %v520_v48  ;;  %v506_v47 = vld [vmem:[#allocation8 + $0x8] sm:$0xff] }
  0x6c   :  { %1355 = vmatpush3.msra.mxu0 %v520_v48  ;;  %v505_v48 = vld [vmem:[#allocation8] sm:$0xff] }
  0x6d   :  { %1278 = vmatmul.mubr.f32.gmra.mxu0 %v124_v25  ;;  %1356 = vmatprep.subr.mxu0 %v519_v49 }
  0x6e   :  { %1280 = vmatprep.mubr.f32.mxu0 %v125_v26  ;;  %1357 = vmatpush3.msra.mxu0 %v519_v49  ;;  %v704_v49 = vld [vmem:[#allocation10 + $0x78] sm:$0xff] }
  0x6f   :  { %1358 = vmatprep.subr.mxu0 %v518_v50  ;;  %1410 = vmatprep.subr.mxu1 %v704_v49 }
  0x70   :  { %1359 = vmatpush3.msra.mxu0 %v518_v50  ;;  %v703_v50 = vld [vmem:[#allocation10 + $0x70] sm:$0xff] }
  0x71   :  { %1281 = vmatmul.mubr.f32.gmra.mxu0 %v126_v27  ;;  %1360 = vmatprep.subr.mxu0 %v517_v51 }
  0x72   :  { %1283 = vmatprep.mubr.f32.mxu0 %v127_v28  ;;  %1361 = vmatpush3.msra.mxu0 %v517_v51  ;;  %v702_v51 = vld [vmem:[#allocation10 + $0x68] sm:$0xff] }
  0x73   :  { %1362 = vmatprep.subr.mxu0 %v516_v52 }
  0x74   :  { %1363 = vmatpush3.msra.mxu0 %v516_v52  ;;  %v701_v52 = vld [vmem:[#allocation10 + $0x60] sm:$0xff] }
  0x75   :  { %1284 = vmatmul.mubr.f32.gmra.mxu0 %v128_v29  ;;  %1364 = vmatprep.subr.mxu0 %v515_v53 }
  0x76   :  { %1286 = vmatprep.mubr.f32.mxu0 %v129_v30  ;;  %1365 = vmatpush3.msra.mxu0 %v515_v53  ;;  %v700_v53 = vld [vmem:[#allocation10 + $0x58] sm:$0xff] }
  0x77   :  { %1366 = vmatprep.subr.mxu0 %v514_v54 }
  0x78   :  { %1367 = vmatpush3.msra.mxu0 %v514_v54  ;;  %v699_v54 = vld [vmem:[#allocation10 + $0x50] sm:$0xff] }
  0x79   :  { %1287 = vmatmul.mubr.f32.gmra.mxu0 %v130_v31  ;;  %1368 = vmatprep.subr.mxu0 %v513_v40 }
  0x7a   :  { %1289 = vmatprep.mubr.f32.mxu0 %v131_v32  ;;  %1369 = vmatpush3.msra.mxu0 %v513_v40 }
  0x7b   :  { %1370 = vmatprep.subr.mxu0 %v512_v41 }
  0x7c   :  { %1371 = vmatpush3.msra.mxu0 %v512_v41  ;;  %v697_v41 = vld [vmem:[#allocation10 + $0x40] sm:$0xff] }
  0x7d   :  { %1290 = vmatmul.mubr.f32.gmra.mxu0 %v132_v33  ;;  %1372 = vmatprep.subr.mxu0 %v511_v42 }
  0x7e   :  { %1292 = vmatprep.mubr.f32.mxu0 %v133_v34  ;;  %1373 = vmatpush3.msra.mxu0 %v511_v42  ;;  %v696_v42 = vld [vmem:[#allocation10 + $0x38] sm:$0xff] }
  0x7f   :  { %1374 = vmatprep.subr.mxu0 %v510_v43 }
  0x80   :  { %1375 = vmatpush3.msra.mxu0 %v510_v43  ;;  %v695_v43 = vld [vmem:[#allocation10 + $0x30] sm:$0xff] }
  0x81   :  { %1293 = vmatmul.mubr.f32.gmra.mxu0 %v134_v35  ;;  %1376 = vmatprep.subr.mxu0 %v509_v44 }
  0x82   :  { %1295 = vmatprep.mubr.f32.mxu0 %v135_v36  ;;  %1377 = vmatpush3.msra.mxu0 %v509_v44  ;;  %v694_v44 = vld [vmem:[#allocation10 + $0x28] sm:$0xff] }
  0x83   :  { %1378 = vmatprep.subr.mxu0 %v508_v45 }
  0x84   :  { %1379 = vmatpush3.msra.mxu0 %v508_v45  ;;  %v693_v45 = vld [vmem:[#allocation10 + $0x20] sm:$0xff] }
  0x85   :  { %1296 = vmatmul.mubr.f32.gmra.mxu0 %v136_v37  ;;  %1380 = vmatprep.subr.mxu0 %v507_v46 }
  0x86   :  { %1381 = vmatpush3.msra.mxu0 %v507_v46  ;;  %v692_v46 = vld [vmem:[#allocation10 + $0x18] sm:$0xff] }
  0x87   :  { %1382 = vmatprep.subr.mxu0 %v506_v47 }
  0x88   :  { %1383 = vmatpush3.msra.mxu0 %v506_v47  ;;  %v691_v47 = vld [vmem:[#allocation10 + $0x10] sm:$0xff] }
  0x89   :  { %1384 = vmatprep.subr.mxu0 %v505_v48 }
  0x8a   :  { %1385 = vmatpush3.msra.mxu0 %v505_v48  ;;  %v690_v48 = vld [vmem:[#allocation10 + $0x8] sm:$0xff] }
 0x129   :  { %v1276_v56 = vpop.f32.mrf.mxu0 }
 0x12a   :  { %v232_v57 = vadd.f32 %v1276_v56, %v1077_v55  ;;  %v1078_v56 = vld [vmem:[%s2007_s4] ss:$0 sm:$0xff] }
 0x12b   :  { %v226_v58 = vpop.f32.mrf.mxu0 }
 0x12c   :  { %v227_v59 = vadd.f32 %v1077_v55, %v226_v58 }
 0x12d   :  { %v1279_v60 = vpop.f32.mrf.mxu0 }
 0x12e   :  { %1563 = vtanh.f32 %v227_v59  ;;  %v242_v61 = vadd.f32 %v1279_v60, %v1077_v55 }
 0x12f   :  { %1565 = vtanh.f32 %v232_v57  ;;  %v236_v62 = vpop.f32.mrf.mxu0 }
 0x130   :  { %v237_v63 = vadd.f32 %v1077_v55, %v236_v62 }
 0x131   :  { %v1282_v0 = vpop.f32.mrf.mxu0 }
 0x132   :  { %1567 = vtanh.f32 %v237_v63  ;;  %v252_v1 = vadd.f32 %v1282_v0, %v1077_v55 }
 0x133   :  { %1569 = vtanh.f32 %v242_v61  ;;  %v246_v2 = vpop.f32.mrf.mxu0 }
 0x134   :  { %v247_v3 = vadd.f32 %v1077_v55, %v246_v2 }
 0x135   :  { %v1285_v4 = vpop.f32.mrf.mxu0 }
 0x136   :  { %1571 = vtanh.f32 %v247_v3  ;;  %v262_v5 = vadd.f32 %v1285_v4, %v1077_v55 }
 0x137   :  { %1573 = vtanh.f32 %v252_v1  ;;  %v256_v6 = vpop.f32.mrf.mxu0 }
 0x138   :  { %v257_v7 = vadd.f32 %v1077_v55, %v256_v6 }
 0x139   :  { %v1288_v8 = vpop.f32.mrf.mxu0 }
 0x13a   :  { %1575 = vtanh.f32 %v257_v7  ;;  %v272_v10 = vadd.f32 %v1288_v8, %v1077_v55 }
 0x13b   :  { %v1564_v9 = vpop.eup %1563  ;;  %1577 = vtanh.f32 %v262_v5  ;;  %v266_v11 = vpop.f32.mrf.mxu0 }
 0x13c   :  { %v1566_v12 = vpop.eup %1565  ;;  %v267_v13 = vadd.f32 %v1077_v55, %v266_v11  ;;  %1330 = vmatprep.mubr.f32.mxu1 %v1564_v9 }
 0x13d   :  { %v1291_v14 = vpop.f32.mrf.mxu0  ;;  %1331 = vmatmul.mubr.f32.vlgmr.msra.gmra.mxu1 %v1566_v12 }
 0x13e   :  { %1579 = vtanh.f32 %v267_v13  ;;  %v282_v16 = vadd.f32 %v1291_v14, %v1077_v55  ;;  %1411 = vmatpush3.msra.mxu1 %v704_v49  ;;  %v689_v49 = vld [vmem:[#allocation10] sm:$0xff] }
 0x13f   :  { %v1568_v15 = vpop.eup %1567  ;;  %1581 = vtanh.f32 %v272_v10  ;;  %v276_v17 = vpop.f32.mrf.mxu0  ;;  %1412 = vmatprep.subr.mxu1 %v703_v50 }
 0x140   :  { %v1570_v18 = vpop.eup %1569  ;;  %v277_v19 = vadd.f32 %v1077_v55, %v276_v17  ;;  %1333 = vmatprep.mubr.f32.mxu1 %v1568_v15  ;;  %1413 = vmatpush3.msra.mxu1 %v703_v50  ;;  %v888_v50 = vld [vmem:[#allocation11 + $0x78] sm:$0xff] }
 0x141   :  { %v1294_v20 = vpop.f32.mrf.mxu0  ;;  %1334 = vmatmul.mubr.f32.gmra.mxu1 %v1570_v18  ;;  %1414 = vmatprep.subr.mxu1 %v702_v51 }
 0x142   :  { %1583 = vtanh.f32 %v277_v19  ;;  %v292_v22 = vadd.f32 %v1294_v20, %v1077_v55  ;;  %1415 = vmatpush3.msra.mxu1 %v702_v51  ;;  %v887_v51 = vld [vmem:[#allocation11 + $0x70] sm:$0xff]  ;;  %1466 = vmatprep.subr.mxu0 %v888_v50 }
 0x143   :  { %v1572_v21 = vpop.eup %1571  ;;  %1585 = vtanh.f32 %v282_v16  ;;  %v286_v23 = vpop.f32.mrf.mxu0  ;;  %1416 = vmatprep.subr.mxu1 %v701_v52 }
 0x144   :  { %v1574_v24 = vpop.eup %1573  ;;  %v287_v25 = vadd.f32 %v1077_v55, %v286_v23  ;;  %1336 = vmatprep.mubr.f32.mxu1 %v1572_v21  ;;  %1417 = vmatpush3.msra.mxu1 %v701_v52  ;;  %v886_v52 = vld [vmem:[#allocation11 + $0x68] sm:$0xff] }
 0x145   :  { %v1297_v26 = vpop.f32.mrf.mxu0  ;;  %1337 = vmatmul.mubr.f32.gmra.mxu1 %v1574_v24  ;;  %1418 = vmatprep.subr.mxu1 %v700_v53 }
 0x146   :  { %1587 = vtanh.f32 %v287_v25  ;;  %v302_v28 = vadd.f32 %v1297_v26, %v1077_v55  ;;  %1419 = vmatpush3.msra.mxu1 %v700_v53  ;;  %v1952_v53 = vld [vmem:[#allocation11 + $0x60] sm:$0xff] }
 0x147   :  { %v1576_v27 = vpop.eup %1575  ;;  %1589 = vtanh.f32 %v292_v22  ;;  %v296_v29 = vpop.f32.mrf.mxu0  ;;  %1420 = vmatprep.subr.mxu1 %v699_v54 }
 0x148   :  { %v1578_v30 = vpop.eup %1577  ;;  %v297_v31 = vadd.f32 %v1077_v55, %v296_v29  ;;  %1339 = vmatprep.mubr.f32.mxu1 %v1576_v27  ;;  %v698_v55 = vld [vmem:[#allocation10 + $0x48] sm:$0xff]  ;;  %1421 = vmatpush3.msra.mxu1 %v699_v54  ;;  %v1954_v54 = vld [vmem:[#allocation11 + $0x58] sm:$0xff] }
 0x149   :  { %1340 = vmatmul.mubr.f32.gmra.mxu1 %v1578_v30  ;;  %1422 = vmatprep.subr.mxu1 %v698_v55 }
 0x14a   :  { %1591 = vtanh.f32 %v297_v31  ;;  %1423 = vmatpush3.msra.mxu1 %v698_v55  ;;  %v1958_v55 = vld [vmem:[#allocation11 + $0x50] sm:$0xff] }
 0x14b   :  { %v1580_v32 = vpop.eup %1579  ;;  %1593 = vtanh.f32 %v302_v28  ;;  %1424 = vmatprep.subr.mxu1 %v697_v41 }
 0x14c   :  { %v1582_v33 = vpop.eup %1581  ;;  %1342 = vmatprep.mubr.f32.mxu1 %v1580_v32  ;;  %1425 = vmatpush3.msra.mxu1 %v697_v41  ;;  %v882_v41 = vld [vmem:[#allocation11 + $0x48] sm:$0xff] }
 0x14d   :  { %1343 = vmatmul.mubr.f32.gmra.mxu1 %v1582_v33  ;;  %1426 = vmatprep.subr.mxu1 %v696_v42 }
 0x14e   :  { %1427 = vmatpush3.msra.mxu1 %v696_v42  ;;  %v881_v42 = vld [vmem:[#allocation11 + $0x40] sm:$0xff] }
 0x14f   :  { %v1584_v34 = vpop.eup %1583  ;;  %1428 = vmatprep.subr.mxu1 %v695_v43 }
 0x150   :  { %v1586_v35 = vpop.eup %1585  ;;  %1345 = vmatprep.mubr.f32.mxu1 %v1584_v34  ;;  %1429 = vmatpush3.msra.mxu1 %v695_v43  ;;  %v880_v43 = vld [vmem:[#allocation11 + $0x38] sm:$0xff] }
 0x151   :  { %1346 = vmatmul.mubr.f32.gmra.mxu1 %v1586_v35  ;;  %1430 = vmatprep.subr.mxu1 %v694_v44 }
 0x152   :  { %1431 = vmatpush3.msra.mxu1 %v694_v44  ;;  %v879_v44 = vld [vmem:[#allocation11 + $0x30] sm:$0xff] }
 0x153   :  { %v1588_v36 = vpop.eup %1587  ;;  %1432 = vmatprep.subr.mxu1 %v693_v45 }
 0x154   :  { %v1590_v37 = vpop.eup %1589  ;;  %1348 = vmatprep.mubr.f32.mxu1 %v1588_v36  ;;  %1433 = vmatpush3.msra.mxu1 %v693_v45  ;;  %v878_v45 = vld [vmem:[#allocation11 + $0x28] sm:$0xff] }
 0x155   :  { %1349 = vmatmul.mubr.f32.gmra.mxu1 %v1590_v37  ;;  %1434 = vmatprep.subr.mxu1 %v692_v46 }
 0x156   :  { %1435 = vmatpush3.msra.mxu1 %v692_v46  ;;  %v877_v46 = vld [vmem:[#allocation11 + $0x20] sm:$0xff] }
 0x157   :  { %v1592_v38 = vpop.eup %1591  ;;  %1436 = vmatprep.subr.mxu1 %v691_v47 }
 0x158   :  { %v1594_v39 = vpop.eup %1593  ;;  %1351 = vmatprep.mubr.f32.mxu1 %v1592_v38  ;;  %1437 = vmatpush3.msra.mxu1 %v691_v47  ;;  %v876_v47 = vld [vmem:[#allocation11 + $0x18] sm:$0xff] }
 0x159   :  { %1352 = vmatmul.mubr.f32.gmra.mxu1 %v1594_v39  ;;  %1438 = vmatprep.subr.mxu1 %v690_v48 }
 0x15a   :  { %1439 = vmatpush3.msra.mxu1 %v690_v48  ;;  %v875_v48 = vld [vmem:[#allocation11 + $0x10] sm:$0xff] }
 0x15b   :  { %1440 = vmatprep.subr.mxu1 %v689_v49 }
 0x15c   :  { %1441 = vmatpush3.msra.mxu1 %v689_v49  ;;  %v874_v49 = vld [vmem:[#allocation11 + $0x8] sm:$0xff] }
 0x15d   :  { %1522 = vmatprep.subr.mxu1 %v888_v50 }
 0x1fd   :  { %v1332_v57 = vpop.f32.mrf.mxu1 }
 0x1fe   :  { %v416_v58 = vadd.f32 %v1332_v57, %v1078_v56 }
 0x1ff   :  { %v410_v59 = vpop.f32.mrf.mxu1 }
 0x200   :  { %v411_v60 = vadd.f32 %v1078_v56, %v410_v59 }
 0x201   :  { %v1335_v61 = vpop.f32.mrf.mxu1 }
 0x202   :  { %1595 = vtanh.f32 %v411_v60  ;;  %v426_v62 = vadd.f32 %v1335_v61, %v1078_v56 }
 0x203   :  { %1597 = vtanh.f32 %v416_v58  ;;  %v420_v63 = vpop.f32.mrf.mxu1 }
 0x204   :  { %v421_v0 = vadd.f32 %v1078_v56, %v420_v63 }
 0x205   :  { %v1338_v1 = vpop.f32.mrf.mxu1 }
 0x206   :  { %1599 = vtanh.f32 %v421_v0  ;;  %v436_v2 = vadd.f32 %v1338_v1, %v1078_v56 }
 0x207   :  { %1601 = vtanh.f32 %v426_v62  ;;  %v430_v3 = vpop.f32.mrf.mxu1 }
 0x208   :  { %v431_v4 = vadd.f32 %v1078_v56, %v430_v3 }
 0x209   :  { %v1341_v5 = vpop.f32.mrf.mxu1 }
 0x20a   :  { %1603 = vtanh.f32 %v431_v4  ;;  %v446_v6 = vadd.f32 %v1341_v5, %v1078_v56 }
 0x20b   :  { %1605 = vtanh.f32 %v436_v2  ;;  %v440_v7 = vpop.f32.mrf.mxu1 }
 0x20c   :  { %v441_v8 = vadd.f32 %v1078_v56, %v440_v7 }
 0x20d   :  { %v1344_v9 = vpop.f32.mrf.mxu1 }
 0x20e   :  { %1607 = vtanh.f32 %v441_v8  ;;  %v456_v11 = vadd.f32 %v1344_v9, %v1078_v56 }
 0x20f   :  { %v1596_v10 = vpop.eup %1595  ;;  %1609 = vtanh.f32 %v446_v6  ;;  %v450_v12 = vpop.f32.mrf.mxu1 }
 0x210   :  { %v1598_v13 = vpop.eup %1597  ;;  %v451_v14 = vadd.f32 %v1078_v56, %v450_v12  ;;  %1386 = vmatprep.mubr.f32.mxu0 %v1596_v10 }
 0x211   :  { %v1347_v15 = vpop.f32.mrf.mxu1  ;;  %1387 = vmatmul.mubr.f32.vlgmr.msra.gmra.mxu0 %v1598_v13 }
 0x212   :  { %1611 = vtanh.f32 %v451_v14  ;;  %v466_v17 = vadd.f32 %v1347_v15, %v1078_v56  ;;  %1467 = vmatpush3.msra.mxu0 %v888_v50 }
 0x213   :  { %v1600_v16 = vpop.eup %1599  ;;  %1613 = vtanh.f32 %v456_v11  ;;  %v460_v18 = vpop.f32.mrf.mxu1  ;;  %1468 = vmatprep.subr.mxu0 %v887_v51 }
 0x214   :  { %v1602_v19 = vpop.eup %1601  ;;  %v461_v20 = vadd.f32 %v1078_v56, %v460_v18  ;;  %1389 = vmatprep.mubr.f32.mxu0 %v1600_v16  ;;  %1469 = vmatpush3.msra.mxu0 %v887_v51 }
 0x215   :  { %v1350_v21 = vpop.f32.mrf.mxu1  ;;  %1390 = vmatmul.mubr.f32.gmra.mxu0 %v1602_v19  ;;  %1470 = vmatprep.subr.mxu0 %v886_v52 }
 0x216   :  { %1615 = vtanh.f32 %v461_v20  ;;  %v476_v23 = vadd.f32 %v1350_v21, %v1078_v56  ;;  %1471 = vmatpush3.msra.mxu0 %v886_v52 }
 0x217   :  { %v1604_v22 = vpop.eup %1603  ;;  %1617 = vtanh.f32 %v466_v17  ;;  %v470_v24 = vpop.f32.mrf.mxu1  ;;  %1472 = vmatprep.subr.mxu0 %v1952_v53 }
 0x218   :  { %v1606_v25 = vpop.eup %1605  ;;  %v471_v26 = vadd.f32 %v1078_v56, %v470_v24  ;;  %1392 = vmatprep.mubr.f32.mxu0 %v1604_v22  ;;  %1473 = vmatpush3.msra.mxu0 %v1952_v53 }
 0x219   :  { %v1353_v27 = vpop.f32.mrf.mxu1  ;;  %1393 = vmatmul.mubr.f32.gmra.mxu0 %v1606_v25  ;;  %1474 = vmatprep.subr.mxu0 %v1954_v54 }
 0x21a   :  { %1619 = vtanh.f32 %v471_v26  ;;  %v486_v29 = vadd.f32 %v1353_v27, %v1078_v56  ;;  %1475 = vmatpush3.msra.mxu0 %v1954_v54 }
 0x21b   :  { %v1608_v28 = vpop.eup %1607  ;;  %1621 = vtanh.f32 %v476_v23  ;;  %v480_v30 = vpop.f32.mrf.mxu1  ;;  %1476 = vmatprep.subr.mxu0 %v1958_v55 }
 0x21c   :  { %v1610_v31 = vpop.eup %1609  ;;  %v481_v32 = vadd.f32 %v1078_v56, %v480_v30  ;;  %1395 = vmatprep.mubr.f32.mxu0 %v1608_v28  ;;  %1477 = vmatpush3.msra.mxu0 %v1958_v55  ;;  %v1967_v56 = vld [vmem:[%s2009_s6] ss:$0 sm:$0xff] }
 0x21d   :  { %1396 = vmatmul.mubr.f32.gmra.mxu0 %v1610_v31  ;;  %1478 = vmatprep.subr.mxu0 %v882_v41 }
 0x21e   :  { %1623 = vtanh.f32 %v481_v32  ;;  %1479 = vmatpush3.msra.mxu0 %v882_v41 }
 0x21f   :  { %v1612_v33 = vpop.eup %1611  ;;  %1625 = vtanh.f32 %v486_v29  ;;  %1480 = vmatprep.subr.mxu0 %v881_v42 }
 0x220   :  { %v1614_v34 = vpop.eup %1613  ;;  %1398 = vmatprep.mubr.f32.mxu0 %v1612_v33  ;;  %1481 = vmatpush3.msra.mxu0 %v881_v42 }
 0x221   :  { %1399 = vmatmul.mubr.f32.gmra.mxu0 %v1614_v34  ;;  %1482 = vmatprep.subr.mxu0 %v880_v43 }
 0x222   :  { %1483 = vmatpush3.msra.mxu0 %v880_v43 }
 0x223   :  { %v1616_v35 = vpop.eup %1615  ;;  %1484 = vmatprep.subr.mxu0 %v879_v44 }
 0x224   :  { %v1618_v36 = vpop.eup %1617  ;;  %1401 = vmatprep.mubr.f32.mxu0 %v1616_v35  ;;  %1485 = vmatpush3.msra.mxu0 %v879_v44 }
 0x225   :  { %1402 = vmatmul.mubr.f32.gmra.mxu0 %v1618_v36  ;;  %1486 = vmatprep.subr.mxu0 %v878_v45 }
 0x226   :  { %1487 = vmatpush3.msra.mxu0 %v878_v45 }
 0x227   :  { %v1620_v37 = vpop.eup %1619  ;;  %1488 = vmatprep.subr.mxu0 %v877_v46 }
 0x228   :  { %v1622_v38 = vpop.eup %1621  ;;  %1404 = vmatprep.mubr.f32.mxu0 %v1620_v37  ;;  %1489 = vmatpush3.msra.mxu0 %v877_v46 }
 0x229   :  { %1405 = vmatmul.mubr.f32.gmra.mxu0 %v1622_v38  ;;  %1490 = vmatprep.subr.mxu0 %v876_v47 }
 0x22a   :  { %1491 = vmatpush3.msra.mxu0 %v876_v47 }
 0x22b   :  { %v1624_v39 = vpop.eup %1623  ;;  %1492 = vmatprep.subr.mxu0 %v875_v48 }
 0x22c   :  { %v1626_v40 = vpop.eup %1625  ;;  %1407 = vmatprep.mubr.f32.mxu0 %v1624_v39  ;;  %1493 = vmatpush3.msra.mxu0 %v875_v48 }
 0x22d   :  { %1408 = vmatmul.mubr.f32.gmra.mxu0 %v1626_v40  ;;  %1494 = vmatprep.subr.mxu0 %v874_v49 }
 0x22e   :  { %1495 = vmatpush3.msra.mxu0 %v874_v49 }
 0x2d1   :  { %v1388_v57 = vpop.f32.mrf.mxu0 }
 0x2d2   :  { %v600_v58 = vadd.f32 %v1388_v57, %v1967_v56 }
 0x2d3   :  { %v594_v59 = vpop.f32.mrf.mxu0 }
 0x2d4   :  { %v595_v60 = vadd.f32 %v1967_v56, %v594_v59 }
 0x2d5   :  { %v1391_v61 = vpop.f32.mrf.mxu0 }
 0x2d6   :  { %1627 = vtanh.f32 %v595_v60  ;;  %v610_v62 = vadd.f32 %v1391_v61, %v1967_v56 }
 0x2d7   :  { %1629 = vtanh.f32 %v600_v58  ;;  %v604_v63 = vpop.f32.mrf.mxu0 }
 0x2d8   :  { %v605_v0 = vadd.f32 %v1967_v56, %v604_v63 }
 0x2d9   :  { %v1394_v1 = vpop.f32.mrf.mxu0 }
 0x2da   :  { %1631 = vtanh.f32 %v605_v0  ;;  %v620_v2 = vadd.f32 %v1394_v1, %v1967_v56 }
 0x2db   :  { %1633 = vtanh.f32 %v610_v62  ;;  %v614_v3 = vpop.f32.mrf.mxu0 }
 0x2dc   :  { %v615_v4 = vadd.f32 %v1967_v56, %v614_v3 }
 0x2dd   :  { %v1397_v5 = vpop.f32.mrf.mxu0 }
 0x2de   :  { %1635 = vtanh.f32 %v615_v4  ;;  %v630_v6 = vadd.f32 %v1397_v5, %v1967_v56 }
 0x2df   :  { %1637 = vtanh.f32 %v620_v2  ;;  %v624_v7 = vpop.f32.mrf.mxu0 }
 0x2e0   :  { %v625_v8 = vadd.f32 %v1967_v56, %v624_v7 }
 0x2e1   :  { %v1400_v9 = vpop.f32.mrf.mxu0 }
 0x2e2   :  { %1639 = vtanh.f32 %v625_v8  ;;  %v640_v11 = vadd.f32 %v1400_v9, %v1967_v56 }
 0x2e3   :  { %v1628_v10 = vpop.eup %1627  ;;  %1641 = vtanh.f32 %v630_v6  ;;  %v634_v12 = vpop.f32.mrf.mxu0 }
 0x2e4   :  { %v1630_v13 = vpop.eup %1629  ;;  %v635_v14 = vadd.f32 %v1967_v56, %v634_v12  ;;  %1442 = vmatprep.mubr.f32.mxu1 %v1628_v10 }
 0x2e5   :  { %v1403_v15 = vpop.f32.mrf.mxu0  ;;  %1443 = vmatmul.mubr.f32.vlgmr.msra.gmra.mxu1 %v1630_v13 }
 0x2e6   :  { %1643 = vtanh.f32 %v635_v14  ;;  %1538 = vmatpush3.msra.mxu1 %v888_v50  ;;  %v650_v17 = vadd.f32 %v1403_v15, %v1967_v56  ;;  %v873_v50 = vld [vmem:[#allocation11] sm:$0xff] }
 0x2e7   :  { %v1632_v16 = vpop.eup %1631  ;;  %1645 = vtanh.f32 %v640_v11  ;;  %v644_v18 = vpop.f32.mrf.mxu0  ;;  %1523 = vmatprep.subr.mxu1 %v887_v51  ;;  %1496 = vmatprep.subr.mxu0 %v873_v50 }
 0x2e8   :  { %v1634_v19 = vpop.eup %1633  ;;  %v645_v20 = vadd.f32 %v1967_v56, %v644_v18  ;;  %1445 = vmatprep.mubr.f32.mxu1 %v1632_v16  ;;  %1539 = vmatpush3.msra.mxu1 %v887_v51  ;;  %v1080_v51 = vld [vmem:[%s2011_s8] ss:$0 sm:$0xff] }
 0x2e9   :  { %v1406_v21 = vpop.f32.mrf.mxu0  ;;  %1446 = vmatmul.mubr.f32.gmra.mxu1 %v1634_v19  ;;  %1524 = vmatprep.subr.mxu1 %v886_v52 }
 0x2ea   :  { %1647 = vtanh.f32 %v645_v20  ;;  %1540 = vmatpush3.msra.mxu1 %v886_v52  ;;  %v660_v23 = vadd.f32 %v1406_v21, %v1967_v56  ;;  %1497 = vmatpush3.msra.mxu0 %v873_v50 }
 0x2eb   :  { %v1636_v22 = vpop.eup %1635  ;;  %1649 = vtanh.f32 %v650_v17  ;;  %v654_v24 = vpop.f32.mrf.mxu0  ;;  %1525 = vmatprep.subr.mxu1 %v1952_v53 }
 0x2ec   :  { %v1638_v25 = vpop.eup %1637  ;;  %v655_v26 = vadd.f32 %v1967_v56, %v654_v24  ;;  %1448 = vmatprep.mubr.f32.mxu1 %v1636_v22  ;;  %1541 = vmatpush3.msra.mxu1 %v1952_v53 }
 0x2ed   :  { %v1409_v27 = vpop.f32.mrf.mxu0  ;;  %1449 = vmatmul.mubr.f32.gmra.mxu1 %v1638_v25  ;;  %1526 = vmatprep.subr.mxu1 %v1954_v54 }
 0x2ee   :  { %1651 = vtanh.f32 %v655_v26  ;;  %1542 = vmatpush3.msra.mxu1 %v1954_v54  ;;  %v670_v29 = vadd.f32 %v1409_v27, %v1967_v56 }
 0x2ef   :  { %v1640_v28 = vpop.eup %1639  ;;  %1653 = vtanh.f32 %v660_v23  ;;  %v664_v30 = vpop.f32.mrf.mxu0  ;;  %1527 = vmatprep.subr.mxu1 %v1958_v55 }
 0x2f0   :  { %v1642_v31 = vpop.eup %1641  ;;  %v665_v32 = vadd.f32 %v1967_v56, %v664_v30  ;;  %1451 = vmatprep.mubr.f32.mxu1 %v1640_v28  ;;  %1543 = vmatpush3.msra.mxu1 %v1958_v55 }
 0x2f1   :  { %1452 = vmatmul.mubr.f32.gmra.mxu1 %v1642_v31  ;;  %1528 = vmatprep.subr.mxu1 %v882_v41 }
 0x2f2   :  { %1655 = vtanh.f32 %v665_v32  ;;  %1544 = vmatpush3.msra.mxu1 %v882_v41 }
 0x2f3   :  { %v1644_v33 = vpop.eup %1643  ;;  %1657 = vtanh.f32 %v670_v29  ;;  %1529 = vmatprep.subr.mxu1 %v881_v42 }
 0x2f4   :  { %v1646_v34 = vpop.eup %1645  ;;  %1454 = vmatprep.mubr.f32.mxu1 %v1644_v33  ;;  %1545 = vmatpush3.msra.mxu1 %v881_v42 }
 0x2f5   :  { %1455 = vmatmul.mubr.f32.gmra.mxu1 %v1646_v34  ;;  %1530 = vmatprep.subr.mxu1 %v880_v43 }
 0x2f6   :  { %1546 = vmatpush3.msra.mxu1 %v880_v43 }
 0x2f7   :  { %v1648_v35 = vpop.eup %1647  ;;  %1531 = vmatprep.subr.mxu1 %v879_v44 }
 0x2f8   :  { %v1650_v36 = vpop.eup %1649  ;;  %1457 = vmatprep.mubr.f32.mxu1 %v1648_v35  ;;  %1547 = vmatpush3.msra.mxu1 %v879_v44 }
 0x2f9   :  { %1458 = vmatmul.mubr.f32.gmra.mxu1 %v1650_v36  ;;  %1532 = vmatprep.subr.mxu1 %v878_v45  ;;  %v1081_v36 = vld [vmem:[%s2013_s10] ss:$0 sm:$0xff]  ;;  %s1849_s10 = smov [#allocation13]  }
 0x2fa   :  { %1548 = vmatpush3.msra.mxu1 %v878_v45  ;;  %s1062_s13 = sshll.u32 %s1849_s10, 4  ;;  %s1063_s13 = int_to_ptr.vmem [resolvable:$true] %s1062_s13 }
 0x2fb   :  { %v1652_v37 = vpop.eup %1651  ;;  %1533 = vmatprep.subr.mxu1 %v877_v46  ;;  %s1811_s1 = scalar_lea.vmem %s1063_s13, 2048  ;;  %p1816_p3 = scmp.lt.s32.totalorder %s1063_s13, %s1063_s13 }
 0x2fc   :  { %v1654_v38 = vpop.eup %1653  ;;  %1460 = vmatprep.mubr.f32.mxu1 %v1652_v37  ;;  %1549 = vmatpush3.msra.mxu1 %v877_v46  ;;  %p1812_p2 = scmp.ne.s32.totalorder %s1063_s13, %s1811_s1  ;;  %p1817_p4 = scmp.lt.s32.totalorder %s1811_s1, %s1811_s1 }
 0x2fd   :  { %1461 = vmatmul.mubr.f32.gmra.mxu1 %v1654_v38  ;;  %1534 = vmatprep.subr.mxu1 %v876_v47 }
 0x2fe   :  { %1550 = vmatpush3.msra.mxu1 %v876_v47  ;;  %p1818_p5 = por %p1817_p4, %p1816_p3 }
 0x2ff   :  { %v1656_v39 = vpop.eup %1655  ;;  %1535 = vmatprep.subr.mxu1 %v875_v48 }
 0x300   :  { %v1658_v40 = vpop.eup %1657  ;;  %1463 = vmatprep.mubr.f32.mxu1 %v1656_v39  ;;  %1551 = vmatpush3.msra.mxu1 %v875_v48  ;;  %p1819_p6 = pnand %p1818_p5, %p1812_p2 }
 0x301   :  { %1464 = vmatmul.mubr.f32.gmra.mxu1 %v1658_v40  ;;  %1536 = vmatprep.subr.mxu1 %v874_v49 }
 0x302   :  { %1552 = vmatpush3.msra.mxu1 %v874_v49 }
 0x303   :  { %1537 = vmatprep.subr.mxu1 %v873_v50 }
 0x304   :  { %1553 = vmatpush3.msra.mxu1 %v873_v50 }
 0x3a5   :  { %v1444_v52 = vpop.f32.mrf.mxu1 }
 0x3a6   :  { %v784_v53 = vadd.f32 %v1444_v52, %v1080_v51 }
 0x3a7   :  { %v778_v54 = vpop.f32.mrf.mxu1 }
 0x3a8   :  { %v779_v55 = vadd.f32 %v1080_v51, %v778_v54 }
 0x3a9   :  { %v1447_v56 = vpop.f32.mrf.mxu1 }
 0x3aa   :  { %1659 = vtanh.f32 %v779_v55  ;;  %v794_v57 = vadd.f32 %v1447_v56, %v1080_v51 }
 0x3ab   :  { %1661 = vtanh.f32 %v784_v53  ;;  %v788_v58 = vpop.f32.mrf.mxu1 }
 0x3ac   :  { %v789_v59 = vadd.f32 %v1080_v51, %v788_v58 }
 0x3ad   :  { %v1450_v60 = vpop.f32.mrf.mxu1 }
 0x3ae   :  { %1663 = vtanh.f32 %v789_v59  ;;  %v804_v61 = vadd.f32 %v1450_v60, %v1080_v51 }
 0x3af   :  { %1665 = vtanh.f32 %v794_v57  ;;  %v798_v62 = vpop.f32.mrf.mxu1 }
 0x3b0   :  { %v799_v63 = vadd.f32 %v1080_v51, %v798_v62 }
 0x3b1   :  { %v1453_v0 = vpop.f32.mrf.mxu1 }
 0x3b2   :  { %1667 = vtanh.f32 %v799_v63  ;;  %v814_v1 = vadd.f32 %v1453_v0, %v1080_v51 }
 0x3b3   :  { %1669 = vtanh.f32 %v804_v61  ;;  %v808_v2 = vpop.f32.mrf.mxu1 }
 0x3b4   :  { %v809_v3 = vadd.f32 %v1080_v51, %v808_v2 }
 0x3b5   :  { %v1456_v4 = vpop.f32.mrf.mxu1 }
 0x3b6   :  { %1671 = vtanh.f32 %v809_v3  ;;  %v824_v6 = vadd.f32 %v1456_v4, %v1080_v51 }
 0x3b7   :  { %v1660_v5 = vpop.eup %1659  ;;  %1673 = vtanh.f32 %v814_v1  ;;  %v818_v7 = vpop.f32.mrf.mxu1 }
 0x3b8   :  { %v1662_v8 = vpop.eup %1661  ;;  %v819_v9 = vadd.f32 %v1080_v51, %v818_v7  ;;  %1498 = vmatprep.mubr.f32.mxu0 %v1660_v5 }
 0x3b9   :  { %v1459_v10 = vpop.f32.mrf.mxu1  ;;  %1499 = vmatmul.mubr.f32.vlgmr.msra.gmra.mxu0 %v1662_v8 }
 0x3ba   :  { %1675 = vtanh.f32 %v819_v9  ;;  %v834_v12 = vadd.f32 %v1459_v10, %v1080_v51 }
 0x3bb   :  { %v1664_v11 = vpop.eup %1663  ;;  %1677 = vtanh.f32 %v824_v6  ;;  %v828_v13 = vpop.f32.mrf.mxu1 }
 0x3bc   :  { %v1666_v14 = vpop.eup %1665  ;;  %v829_v15 = vadd.f32 %v1080_v51, %v828_v13  ;;  %1501 = vmatprep.mubr.f32.mxu0 %v1664_v11 }
 0x3bd   :  { %v1462_v16 = vpop.f32.mrf.mxu1  ;;  %1502 = vmatmul.mubr.f32.gmra.mxu0 %v1666_v14 }
 0x3be   :  { %1679 = vtanh.f32 %v829_v15  ;;  %v844_v18 = vadd.f32 %v1462_v16, %v1080_v51 }
 0x3bf   :  { %v1668_v17 = vpop.eup %1667  ;;  %1681 = vtanh.f32 %v834_v12  ;;  %v838_v19 = vpop.f32.mrf.mxu1 }
 0x3c0   :  { %v1670_v20 = vpop.eup %1669  ;;  %v839_v21 = vadd.f32 %v1080_v51, %v838_v19  ;;  %1504 = vmatprep.mubr.f32.mxu0 %v1668_v17 }
 0x3c1   :  { %v1465_v22 = vpop.f32.mrf.mxu1  ;;  %1505 = vmatmul.mubr.f32.gmra.mxu0 %v1670_v20 }
 0x3c2   :  { %1683 = vtanh.f32 %v839_v21  ;;  %v854_v24 = vadd.f32 %v1465_v22, %v1080_v51 }
 0x3c3   :  { %v1672_v23 = vpop.eup %1671  ;;  %1685 = vtanh.f32 %v844_v18  ;;  %v848_v25 = vpop.f32.mrf.mxu1 }
 0x3c4   :  { %v1674_v26 = vpop.eup %1673  ;;  %v849_v27 = vadd.f32 %v1080_v51, %v848_v25  ;;  %1507 = vmatprep.mubr.f32.mxu0 %v1672_v23 }
 0x3c5   :  { %1508 = vmatmul.mubr.f32.gmra.mxu0 %v1674_v26 }
 0x3c6   :  { %1687 = vtanh.f32 %v849_v27 }
 0x3c7   :  { %v1676_v28 = vpop.eup %1675  ;;  %1689 = vtanh.f32 %v854_v24 }
 0x3c8   :  { %v1678_v29 = vpop.eup %1677  ;;  %1510 = vmatprep.mubr.f32.mxu1 %v1676_v28 }
 0x3c9   :  { %1511 = vmatmul.mubr.f32.vlgmr.msra.gmra.mxu1 %v1678_v29 }
 0x3cb   :  { %v1680_v30 = vpop.eup %1679 }
 0x3cc   :  { %v1682_v31 = vpop.eup %1681  ;;  %1513 = vmatprep.mubr.f32.mxu1 %v1680_v30 }
 0x3cd   :  { %1514 = vmatmul.mubr.f32.gmra.mxu1 %v1682_v31 }
 0x3cf   :  { %v1684_v32 = vpop.eup %1683 }
 0x3d0   :  { %v1686_v33 = vpop.eup %1685  ;;  %1516 = vmatprep.mubr.f32.mxu1 %v1684_v32 }
 0x3d1   :  { %1517 = vmatmul.mubr.f32.gmra.mxu1 %v1686_v33 }
 0x3d3   :  { %v1688_v34 = vpop.eup %1687 }
 0x3d4   :  { %v1690_v35 = vpop.eup %1689  ;;  %1519 = vmatprep.mubr.f32.mxu1 %v1688_v34 }
 0x3d5   :  { %1520 = vmatmul.mubr.f32.gmra.mxu1 %v1690_v35 }
 0x479   :  { %v1500_v37 = vpop.f32.mrf.mxu0 }
 0x47a   :  { %v968_v38 = vadd.f32 %v1500_v37, %v1081_v36 }
 0x47b   :  { %v962_v39 = vpop.f32.mrf.mxu0 }
 0x47c   :  { %1042 = vst [vmem:[#allocation13 + $0x8] sm:$0xff] %v968_v38  ;;  %v963_v40 = vadd.f32 %v1081_v36, %v962_v39 }
 0x47d   :  { %v1503_v41 = vpop.f32.mrf.mxu0 }
 0x47e   :  { %1041 = vst [vmem:[#allocation13] sm:$0xff] %v963_v40  ;;  %v978_v42 = vadd.f32 %v1503_v41, %v1081_v36 }
 0x47f   :  { %v972_v43 = vpop.f32.mrf.mxu0 }
 0x480   :  { %1044 = vst [vmem:[#allocation13 + $0x18] sm:$0xff] %v978_v42  ;;  %v973_v44 = vadd.f32 %v1081_v36, %v972_v43 }
 0x481   :  { %v1506_v45 = vpop.f32.mrf.mxu0 }
 0x482   :  { %1043 = vst [vmem:[#allocation13 + $0x10] sm:$0xff] %v973_v44  ;;  %v988_v46 = vadd.f32 %v1506_v45, %v1081_v36 }
 0x483   :  { %v982_v47 = vpop.f32.mrf.mxu0 }
 0x484   :  { %1046 = vst [vmem:[#allocation13 + $0x28] sm:$0xff] %v988_v46  ;;  %v983_v48 = vadd.f32 %v1081_v36, %v982_v47 }
 0x485   :  { %v1509_v49 = vpop.f32.mrf.mxu0 }
 0x486   :  { %1045 = vst [vmem:[#allocation13 + $0x20] sm:$0xff] %v983_v48  ;;  %v998_v50 = vadd.f32 %v1509_v49, %v1081_v36 }
 0x487   :  { %v992_v51 = vpop.f32.mrf.mxu0 }
 0x488   :  { %1048 = vst [vmem:[#allocation13 + $0x38] sm:$0xff] %v998_v50  ;;  %v993_v52 = vadd.f32 %v1081_v36, %v992_v51 }
 0x489   :  { %v1512_v53 = vpop.f32.mrf.mxu1 }
 0x48a   :  { %1047 = vst [vmem:[#allocation13 + $0x30] sm:$0xff] %v993_v52  ;;  %v1008_v54 = vadd.f32 %v1512_v53, %v1081_v36 }
 0x48b   :  { %v1002_v55 = vpop.f32.mrf.mxu1 }
 0x48c   :  { %1050 = vst [vmem:[#allocation13 + $0x48] sm:$0xff] %v1008_v54  ;;  %v1003_v56 = vadd.f32 %v1081_v36, %v1002_v55 }
 0x48d   :  { %v1515_v57 = vpop.f32.mrf.mxu1 }
 0x48e   :  { %1049 = vst [vmem:[#allocation13 + $0x40] sm:$0xff] %v1003_v56  ;;  %v1018_v58 = vadd.f32 %v1515_v57, %v1081_v36 }
 0x48f   :  { %v1012_v59 = vpop.f32.mrf.mxu1 }
 0x490   :  { %1052 = vst [vmem:[#allocation13 + $0x58] sm:$0xff] %v1018_v58  ;;  %v1013_v60 = vadd.f32 %v1081_v36, %v1012_v59 }
 0x491   :  { %v1518_v61 = vpop.f32.mrf.mxu1 }
 0x492   :  { %1051 = vst [vmem:[#allocation13 + $0x50] sm:$0xff] %v1013_v60  ;;  %v1028_v62 = vadd.f32 %v1518_v61, %v1081_v36 }
 0x493   :  { %v1022_v63 = vpop.f32.mrf.mxu1 }
 0x494   :  { %1054 = vst [vmem:[#allocation13 + $0x68] sm:$0xff] %v1028_v62  ;;  %v1023_v0 = vadd.f32 %v1081_v36, %v1022_v63 }
 0x495   :  { %v1521_v1 = vpop.f32.mrf.mxu1 }
 0x496   :  { %1053 = vst [vmem:[#allocation13 + $0x60] sm:$0xff] %v1023_v0  ;;  %v1038_v2 = vadd.f32 %v1521_v1, %v1081_v36 }
 0x497   :  { %v1032_v3 = vpop.f32.mrf.mxu1 }
 0x498   :  { %1056 = vst [vmem:[#allocation13 + $0x78] sm:$0xff] %v1038_v2  ;;  %v1033_v4 = vadd.f32 %v1081_v36, %v1032_v3 }
 0x49a   :  { %1055 = vst [vmem:[#allocation13 + $0x70] sm:$0xff] %v1033_v4 }
 0x49b   :  { %1822 = shalt.err (!%p1819_p6)
}
 0x49c   :  { %1068 = dma.vmem_to_hbm [thread:$0]  %s1063_s13, 2048, %s2014_s11, [#allocation4], %s1843_s22, %s1843_s22, %s1844_s23  }
 0x49d   :  { %1839 = dma.done.wait [#allocation4], 2048  }
 0x49e   :  { %1840 = vsyncadd [#allocation4], 4294965248 }
 0x49f   :  { %1072 = vsyncpa [#allocation3], 1 }
 0x4a0   :  { %1073 = vsyncpa [#allocation6], 1 }
 0x4a1   :  { %1074 = vsyncpa [#allocation9], 1 }
 0x4a2   :  { %1075 = vsyncpa [#allocation12], 1 }
 0x4a3   :  { %1076 = vsyncpa [#allocation4], 1 }

</bundles_post_ra>
